<compile_context>
chip_gen: v7x
topology: tpu7x:2x2x1
jax: 0.10.0
libtpu: 0.0.40
codegen_flags: <defaults>
</compile_context>

<pallas_src>
import math
import numpy as np

import jax
import jax.numpy as jnp
from jax import lax
from jax.experimental import pallas as pl
from jax.experimental.pallas import tpu as pltpu

# ----- module hyper-parameters (small, consistent with the PyTorch module) -----
EMBED = 32                   # embed_size
INPUT = 48                   # input_size = embed_size + cond_size
COND = INPUT - EMBED         # conditioning feature size
HEADS = 4                    # num_heads
HEAD_DIM = EMBED // HEADS
FWD_EXP = 4                  # forward_expansion
FF = FWD_EXP * EMBED
SEQ = 8
BATCH = 2
BS = BATCH * SEQ
EPS = 1e-5                   # nn.LayerNorm default eps
NEG_MASK = -1e9              # additive "minus infinity"

W_LANES = 6 * EMBED          # 192: widest weight slab ([reduced | q | k | v | q_rot | k_rot])
V_LANES = 6 * EMBED          # 192: widest vector slab (fused bias)


# --------------------------------------------------------------------------------------
# Packed-parameter layouts (static, shared between the host packer and the kernel).
# --------------------------------------------------------------------------------------
def _layout(entries, align):
    table, r = {}, 0
    for name, rows, cols in entries:
        table[name] = (r, rows, cols)
        r = -(-(r + rows) // align) * align
    return table, r


# bf16 matmul weights (sublane offsets aligned to the bf16 tile height of 16)
_W_LAYOUT, _W_ROWS = _layout(
    [
        ("wbig",  INPUT, 6 * EMBED),    # fused [Wr | Wr@Wqkv_ext]  (48 x 192)
        ("wo",    EMBED, EMBED),        # attention out_proj
        ("w1",    EMBED, FF),           # feed_forward[0]
        ("w2",    FF, EMBED),           # feed_forward[2]
        ("hmask", HEADS * BS, EMBED),   # exact 0/1 head mask (bf16, used on the MXU)
    ],
    16,
)
_W_ROWS = -(-_W_ROWS // 16) * 16

# f32 vectors / constants; every row-vector is pre-broadcast to BS rows host-side
_V_LAYOUT, _V_ROWS = _layout(
    [
        ("cos",     BS, EMBED),          # RoPE cos, tiled across heads & batch
        ("sin",     BS, EMBED),
        ("bigmask", BS, HEADS * BS),     # additive causal + batch-block attention mask
        ("ln1g",    BS, EMBED), ("ln1b", BS, EMBED),
        ("bbig",    BS, 6 * EMBED),      # fused bias [br | br@Wqkv_ext + bqkv_ext]
        ("bo",      BS, EMBED),
        ("ln2g",    BS, EMBED), ("ln2b", BS, EMBED),
        ("b1",      BS, FF),    ("b2",   BS, EMBED),
    ],
    8,
)
_V_ROWS = -(-_V_ROWS // 8) * 8


# --------------------------------------------------------------------------------------
# Kernel
# --------------------------------------------------------------------------------------
def transformer_block_kernel(src_ref, cond_ref, w_ref, v_ref, out_ref):
    f32, bf16 = jnp.float32, jnp.bfloat16

    def wslab(name):                      # static slice of the bf16 weight pack
        r0, rows, cols = _W_LAYOUT[name]
        return w_ref[r0:r0 + rows, 0:cols]

    def vslab(name):                      # static slice of the f32 vector/constant pack
        r0, rows, cols = _V_LAYOUT[name]
        return v_ref[r0:r0 + rows, 0:cols]

    def mm(a, b):                         # (m,k)@(k,n), f32 accumulation on the MXU
        return jnp.dot(a, b, preferred_element_type=f32)

    def mm_nt(a, b):                      # (m,k)x(n,k)->(m,n): contract last dims (no transpose)
        return lax.dot_general(a, b, (((1,), (1,)), ((), ())),
                               preferred_element_type=f32)

    def layernorm(x, g, b):
        mu = jnp.mean(x, axis=-1, keepdims=True)
        var = jnp.mean(jnp.square(x - mu), axis=-1, keepdims=True)
        return (x - mu) * lax.rsqrt(var + EPS) * g + b

    src = src_ref[...]                                     # (BS, E)  f32
    cond = cond_ref[...]                                   # (BS, C)  f32

    # ---- norm1 + ONE fused matmul producing reduced, q, k, v, q_rot, k_rot ----
    nsrc = layernorm(src, vslab("ln1g"), vslab("ln1b"))
    comb = jnp.concatenate([nsrc, cond], axis=-1).astype(bf16)       # (BS, E+C)
    big = mm(comb, wslab("wbig")) + vslab("bbig")                    # (BS, 6E)  f32

    reduced = big[:, 0:EMBED]
    q_pre   = big[:, EMBED:2 * EMBED]          # 1/sqrt(Dh) already folded in host-side
    k_pre   = big[:, 2 * EMBED:3 * EMBED]
    v       = big[:, 3 * EMBED:4 * EMBED]
    q_rot   = big[:, 4 * EMBED:5 * EMBED]      # == rotate_half(q_pre) via folded P
    k_rot   = big[:, 5 * EMBED:6 * EMBED]      # == rotate_half(k_pre) via folded P

    # ---- RoPE on the VPU only (rotate-half columns came out of the fused matmul) ----
    cos = vslab("cos")
    sin = vslab("sin")
    q = q_pre * cos + q_rot * sin
    k = k_pre * cos + k_rot * sin

    # ---- all-head attention with 2-D bf16 matmuls:
    # k_rep / v_rep stack H head-masked copies of K / V along sublanes, so one
    # (BS,E)x(E,H*BS) matmul yields all heads' score blocks side by side in the lanes.
    hmask = wslab("hmask")                                 # (H*BS, E) exact 0/1 bf16
    k_rep = jnp.concatenate([k.astype(bf16)] * HEADS, axis=0) * hmask
    v_rep = jnp.concatenate([v.astype(bf16)] * HEADS, axis=0) * hmask

    scores = mm_nt(q.astype(bf16), k_rep) + vslab("bigmask")         # (BS, H*BS) f32
    # A single row-max over all heads is still an exact softmax shift as long as per-head
    # score ranges stay within the f32 exp underflow window; masked entries underflow to 0.
    m = jnp.max(scores, axis=-1, keepdims=True)
    p = jnp.exp(scores - m).astype(bf16)                   # unnormalized probabilities
    attn = mm(p, v_rep)                                    # (BS, E): heads land re-packed
    denom = mm(p, hmask)                                   # per-head softmax denominators
    attn = attn * pl.reciprocal(denom, approx=False)       # exact deferred normalization

    attn_out = mm(attn.astype(bf16), wslab("wo")) + vslab("bo")
    x = attn_out + reduced                                 # dropout == identity (inference)

    # ---- norm2 + feed-forward + residual (elementwise math kept in f32) ----
    nx = layernorm(x, vslab("ln2g"), vslab("ln2b"))
    hidden = jnp.maximum(mm(nx.astype(bf16), wslab("w1")) + vslab("b1"), 0.0)
    ff = mm(hidden.astype(bf16), wslab("w2")) + vslab("b2")

    out_ref[...] = ff + x


# --------------------------------------------------------------------------------------
# Host-side parameter folding / packing (done ONCE per weight set)
# --------------------------------------------------------------------------------------
def _canonical_params(params):
    (ln1g, ln1b, wr_s, wr_c, br, wq, wk, wv, bq, bk, bv, wo, bo,
     ln2g, ln2b, w1, b1, w2, b2) = params
    scale = 1.0 / math.sqrt(HEAD_DIM)
    return {
        "ln1g": ln1g, "ln1b": ln1b,
        "wr": jnp.concatenate([wr_s, wr_c], axis=0),                 # (E+C, E)
        "br": br,
        "wqkv": jnp.concatenate([wq * scale, wk, wv], axis=1),       # (E, 3E), q pre-scaled
        "bqkv": jnp.concatenate([bq * scale, bk, bv], axis=1),       # (1, 3E)
        "wo": wo, "bo": bo,
        "ln2g": ln2g, "ln2b": ln2b,
        "w1": w1, "b1": b1, "w2": w2, "b2": b2,
    }


def _pack(layout, total_rows, lanes, arrays, dtype):
    buf = jnp.zeros((total_rows, lanes), dtype)
    for name, arr in arrays.items():
        r0, rows, cols = layout[name]
        assert arr.shape == (rows, cols), (name, arr.shape, (rows, cols))
        buf = buf.at[r0:r0 + rows, 0:cols].set(arr.astype(dtype))
    return buf


def _build_packs(mask, cos_head, sin_head, params):
    cp = _canonical_params(params)
    hi = lax.Precision.HIGHEST                     # compose in f32, cast to bf16 ONCE

    # signed block-permutation matrix implementing per-head rotate-half: x @ P == rot_half(x)
    half = HEAD_DIM // 2
    p_head = np.zeros((HEAD_DIM, HEAD_DIM), np.float32)
    p_head[half:, :half] = -np.eye(half, dtype=np.float32)
    p_head[:half, half:] = np.eye(half, dtype=np.float32)
    prot = jnp.asarray(np.kron(np.eye(HEADS, dtype=np.float32), p_head))   # (E, E)

    wq_s = cp["wqkv"][:, 0:EMBED]
    wk_w = cp["wqkv"][:, EMBED:2 * EMBED]
    bq_s = cp["bqkv"][:, 0:EMBED]
    bk_b = cp["bqkv"][:, EMBED:2 * EMBED]

    # Extended QKV: [q | k | v | q@P | k@P]  -> RoPE rotate-half becomes pure VPU in-kernel
    wqkv_ext = jnp.concatenate([cp["wqkv"],
                                jnp.dot(wq_s, prot, precision=hi),
                                jnp.dot(wk_w, prot, precision=hi)], axis=1)   # (E, 5E)
    bqkv_ext = jnp.concatenate([cp["bqkv"],
                                jnp.dot(bq_s, prot, precision=hi),
                                jnp.dot(bk_b, prot, precision=hi)], axis=1)   # (1, 5E)

    # Fold linear_reduce into the same projection: comb @ [Wr | Wr@Wqkv_ext]
    wbig = jnp.concatenate([cp["wr"],
                            jnp.dot(cp["wr"], wqkv_ext, precision=hi)], axis=1)        # (E+C, 6E)
    bbig = jnp.concatenate([cp["br"],
                            jnp.dot(cp["br"], wqkv_ext, precision=hi) + bqkv_ext],
                           axis=1)                                                      # (1, 6E)

    # full-width RoPE tables: tile (S, Dh) across heads then across batch -> (BS, E)
    cos_full = jnp.tile(jnp.tile(cos_head, (1, HEADS)), (BATCH, 1))
    sin_full = jnp.tile(jnp.tile(sin_head, (1, HEADS)), (BATCH, 1))

    # head mask: row h*BS+j of the replicated K/V keeps only head h's lanes
    row_head = np.repeat(np.arange(HEADS), BS)
    col_head = np.repeat(np.arange(HEADS), HEAD_DIM)
    hmask = jnp.asarray((row_head[:, None] == col_head[None, :]).astype(np.float32))

    # additive attention mask: causal inside each batch block, -1e9 across batches,
    # tiled across the H head blocks of the score-matrix columns.
    rb = np.repeat(np.arange(BATCH), SEQ)
    same_batch = jnp.asarray(rb[:, None] == rb[None, :])
    base = jnp.where(same_batch, jnp.tile(mask, (BATCH, BATCH)), NEG_MASK)
    bigmask = jnp.tile(base, (1, HEADS)).astype(jnp.float32)

    def bs_rows(v):                       # pre-broadcast (1,n) rows to BS rows (plain vreg adds)
        return jnp.broadcast_to(v.reshape(1, -1), (BS, v.shape[-1]))

    w_arrays = {"wbig": wbig, "wo": cp["wo"], "w1": cp["w1"], "w2": cp["w2"], "hmask": hmask}
    v_arrays = {"cos": cos_full, "sin": sin_full, "bigmask": bigmask,
                "ln1g": bs_rows(cp["ln1g"]), "ln1b": bs_rows(cp["ln1b"]),
                "bbig": bs_rows(bbig), "bo": bs_rows(cp["bo"]),
                "ln2g": bs_rows(cp["ln2g"]), "ln2b": bs_rows(cp["ln2b"]),
                "b1": bs_rows(cp["b1"]), "b2": bs_rows(cp["b2"])}

    wpack = _pack(_W_LAYOUT, _W_ROWS, W_LANES, w_arrays, jnp.bfloat16)
    vpack = _pack(_V_LAYOUT, _V_ROWS, V_LANES, v_arrays, jnp.float32)
    return wpack, vpack


def make_transformer_block(mask, cos_head, sin_head, params):
    """Pack/fold parameters ONCE and return a jitted forward: (src, cond) -> (B,S,E)."""
    wpack, vpack = _build_packs(mask, cos_head, sin_head, params)
    wpack = jax.device_put(wpack)
    vpack = jax.device_put(vpack)

    vmem = pltpu.MemorySpace.VMEM
    kernel_call = pl.pallas_call(
        transformer_block_kernel,
        out_shape=jax.ShapeDtypeStruct((BS, EMBED), jnp.float32),
        in_specs=[pl.BlockSpec(memory_space=vmem)] * 4,
        out_specs=pl.BlockSpec(memory_space=vmem),
        # NOTE(v7x/v6e scaling): at this size a single TensorCore / single invocation is
        # fastest; for large BS reintroduce a leading row-block grid with
        # dimension_semantics=("parallel",) (weights stay resident, only activations tile),
        # and size the row tile against 64 MiB physical VMEM on v7x (raise the scoped limit
        # via pltpu.CompilerParams(vmem_limit_bytes=...) with double-buffering headroom).
    )

    @jax.jit
    def forward(src, cond):
        out = kernel_call(src.reshape(BS, EMBED), cond.reshape(BS, COND), wpack, vpack)
        return out.reshape(BATCH, SEQ, EMBED)

    return forward


# --------------------------------------------------------------------------------------
# Pure-JAX reference (module semantics with bf16 weight matmuls) for correctness check
# --------------------------------------------------------------------------------------
def reference(src, cond, mask, cos_head, sin_head, params):
    cp = _canonical_params(params)
    f32, bf16 = jnp.float32, jnp.bfloat16
    B, S, E = src.shape

    def ln(x, g, b):
        mu = jnp.mean(x, axis=-1, keepdims=True)
        var = jnp.mean(jnp.square(x - mu), axis=-1, keepdims=True)
        return (x - mu) * lax.rsqrt(var + EPS) * g + b

    def bdot(a, wgt):
        return jnp.dot(a.astype(bf16), wgt.astype(bf16), preferred_element_type=f32)

    nsrc = ln(src, cp["ln1g"], cp["ln1b"])
    comb = jnp.concatenate([nsrc, cond], axis=-1)
    reduced = bdot(comb, cp["wr"]) + cp["br"]

    qkv = bdot(reduced, cp["wqkv"]) + cp["bqkv"]
    q, k, v = qkv[..., :E], qkv[..., E:2 * E], qkv[..., 2 * E:]

    def rope(x):
        xh = x.reshape(B, S, HEADS, HEAD_DIM)
        x1, x2 = xh[..., : HEAD_DIM // 2], xh[..., HEAD_DIM // 2:]
        rot = jnp.concatenate([-x2, x1], axis=-1)
        out = xh * cos_head[None, :, None, :] + rot * sin_head[None, :, None, :]
        return out.reshape(B, S, E)

    q, k = rope(q), rope(k)     # 1/sqrt(Dh) already folded into the Q weights/bias
    qh = q.reshape(B, S, HEADS, HEAD_DIM).astype(bf16)
    kh = k.reshape(B, S, HEADS, HEAD_DIM).astype(bf16)
    vh = v.reshape(B, S, HEADS, HEAD_DIM)
    scores = jnp.einsum("bqhd,bkhd->bhqk", qh, kh,
                        preferred_element_type=f32) + mask[None, None]
    p = jax.nn.softmax(scores, axis=-1)
    attn = jnp.einsum("bhqk,bkhd->bqhd", p, vh).reshape(B, S, E)
    x = bdot(attn, cp["wo"]) + cp["bo"] + reduced

    nx = ln(x, cp["ln2g"], cp["ln2b"])
    hdn = jnp.maximum(bdot(nx, cp["w1"]) + cp["b1"], 0.0)
    ff = bdot(hdn, cp["w2"]) + cp["b2"]
    return ff + x


if __name__ == "__main__":
    key = jax.random.PRNGKey(0)
    ks = jax.random.split(key, 24)

    def rnd(k, shape, scale=0.05):
        return (scale * jax.random.normal(k, shape)).astype(jnp.float32)

    src = rnd(ks[0], (BATCH, SEQ, EMBED), 1.0)
    cond = rnd(ks[1], (BATCH, SEQ, COND), 1.0)

    # causal additive float attention mask
    idx = jnp.arange(SEQ)
    mask = jnp.where(idx[None, :] <= idx[:, None], 0.0, NEG_MASK).astype(jnp.float32)

    # RoPE tables (rotate-half / NeoX convention on the head dim)
    inv_freq = 1.0 / (10000.0 ** (jnp.arange(0, HEAD_DIM, 2, dtype=jnp.float32) / HEAD_DIM))
    ang = jnp.arange(SEQ, dtype=jnp.float32)[:, None] * inv_freq[None, :]
    cos_head = jnp.concatenate([jnp.cos(ang), jnp.cos(ang)], axis=-1).astype(jnp.float32)
    sin_head = jnp.concatenate([jnp.sin(ang), jnp.sin(ang)], axis=-1).astype(jnp.float32)

    # ----- deterministic parameters (shapes from the module __init__, stored (in, out)) -----
    params = (
        1.0 + rnd(ks[2], (1, EMBED)),        # norm1.weight
        rnd(ks[3], (1, EMBED)),              # norm1.bias
        rnd(ks[4], (EMBED, EMBED)),          # linear_reduce.W (rows for normalized src)
        rnd(ks[5], (COND, EMBED)),           # linear_reduce.W (rows for cond)
        rnd(ks[6], (1, EMBED)),              # linear_reduce.bias
        rnd(ks[7], (EMBED, EMBED)),          # attention in_proj Wq
        rnd(ks[8], (EMBED, EMBED)),          # Wk
        rnd(ks[9], (EMBED, EMBED)),          # Wv
        rnd(ks[10], (1, EMBED)),             # bq
        rnd(ks[11], (1, EMBED)),             # bk
        rnd(ks[12], (1, EMBED)),             # bv
        rnd(ks[13], (EMBED, EMBED)),         # attention out_proj.weight
        rnd(ks[14], (1, EMBED)),             # attention out_proj.bias
        1.0 + rnd(ks[15], (1, EMBED)),       # norm2.weight
        rnd(ks[16], (1, EMBED)),             # norm2.bias
        rnd(ks[17], (EMBED, FF)),            # feed_forward[0].weight
        rnd(ks[18], (1, FF)),                # feed_forward[0].bias
        rnd(ks[19], (FF, EMBED)),            # feed_forward[2].weight
        rnd(ks[20], (1, EMBED)),             # feed_forward[2].bias
    )

    # Pack once, jit once; per-step cost is just reshape + pallas_call.
    forward = make_transformer_block(mask, cos_head, sin_head, params)
    out = forward(src, cond)
    out = jax.block_until_ready(out)
    out = jax.block_until_ready(forward(src, cond))   # cached path, no re-packing

    ref = reference(src, cond, mask, cos_head, sin_head, params)
    assert out.shape == (BATCH, SEQ, EMBED)
    max_err = float(jnp.max(jnp.abs(out - ref)))
    assert jnp.allclose(out, ref, atol=3e-3, rtol=3e-3), \
        f"mismatch vs JAX reference (max abs err {max_err})"

    print("KERNEL_OK")
</pallas_src>

<mosaic_0001>
module attributes {stable_mosaic.version = 11 : i64} {
  func.func @transformer_block_kernel(%arg0: memref<16x32xf32, #tpu.memory_space<vmem>>, %arg1: memref<16x16xf32, #tpu.memory_space<vmem>>, %arg2: memref<304x192xbf16, #tpu.memory_space<vmem>>, %arg3: memref<176x192xf32, #tpu.memory_space<vmem>>, %arg4: memref<16x32xf32, #tpu.memory_space<vmem>>) attributes {dimension_semantics = [], scalar_prefetch = 0 : i64, scratch_operands = 0 : i64, tpu.core_type = #tpu.core_type<tc>} {
    %c0 = arith.constant 0 : index
    %c0_0 = arith.constant 0 : index
    %0 = vector.load %arg0[%c0, %c0_0] : memref<16x32xf32, #tpu.memory_space<vmem>>, vector<16x32xf32>
    %c0_1 = arith.constant 0 : index
    %c0_2 = arith.constant 0 : index
    %1 = vector.load %arg1[%c0_1, %c0_2] : memref<16x16xf32, #tpu.memory_space<vmem>>, vector<16x16xf32>
    %c48 = arith.constant 48 : index
    %c0_3 = arith.constant 0 : index
    %2 = vector.load %arg3[%c48, %c0_3] : memref<176x192xf32, #tpu.memory_space<vmem>>, vector<16x32xf32>
    %c64 = arith.constant 64 : index
    %c0_4 = arith.constant 0 : index
    %3 = vector.load %arg3[%c64, %c0_4] : memref<176x192xf32, #tpu.memory_space<vmem>>, vector<16x32xf32>
    %cst = arith.constant dense<0.000000e+00> : vector<16xf32>
    %4 = vector.multi_reduction <add>, %0, %cst [1] : vector<16x32xf32> to vector<16xf32>
    %5 = vector.shape_cast %4 : vector<16xf32> to vector<16x1xf32>
    %cst_5 = arith.constant 3.200000e+01 : f32
    %6 = vector.broadcast %cst_5 : f32 to vector<16x1xf32>
    %7 = arith.divf %5, %6 : vector<16x1xf32>
    %8 = vector.broadcast %7 : vector<16x1xf32> to vector<16x32xf32>
    %9 = arith.subf %0, %8 : vector<16x32xf32>
    %10 = arith.mulf %9, %9 : vector<16x32xf32>
    %cst_6 = arith.constant dense<0.000000e+00> : vector<16xf32>
    %11 = vector.multi_reduction <add>, %10, %cst_6 [1] : vector<16x32xf32> to vector<16xf32>
    %12 = vector.shape_cast %11 : vector<16xf32> to vector<16x1xf32>
    %cst_7 = arith.constant 3.200000e+01 : f32
    %13 = vector.broadcast %cst_7 : f32 to vector<16x1xf32>
    %14 = arith.divf %12, %13 : vector<16x1xf32>
    %15 = vector.broadcast %7 : vector<16x1xf32> to vector<16x32xf32>
    %16 = arith.subf %0, %15 : vector<16x32xf32>
    %cst_8 = arith.constant 9.99999974E-6 : f32
    %17 = vector.broadcast %cst_8 : f32 to vector<16x1xf32>
    %18 = arith.addf %14, %17 : vector<16x1xf32>
    %19 = math.rsqrt %18 : vector<16x1xf32>
    %20 = vector.broadcast %19 : vector<16x1xf32> to vector<16x32xf32>
    %21 = arith.mulf %16, %20 : vector<16x32xf32>
    %22 = arith.mulf %21, %2 : vector<16x32xf32>
    %23 = arith.addf %22, %3 : vector<16x32xf32>
    %24 = tpu.concatenate %23, %1 in 1 : vector<16x32xf32>, vector<16x16xf32> -> vector<16x48xf32>
    %25 = arith.truncf %24 : vector<16x48xf32> to vector<16x48xbf16>
    %c0_9 = arith.constant 0 : index
    %c0_10 = arith.constant 0 : index
    %26 = vector.load %arg2[%c0_9, %c0_10] : memref<304x192xbf16, #tpu.memory_space<vmem>>, vector<48x192xbf16>
    %cst_11 = arith.constant dense<0.000000e+00> : vector<16x192xf32>
    %27 = tpu.matmul %25, %26, %cst_11 {dimension_numbers = #tpu.dot_dimension_numbers<[1], [0], [0], [1], [0, 0, 1, 1], [], []>} : vector<16x48xbf16>, vector<48x192xbf16>, vector<16x192xf32> -> vector<16x192xf32>
    %c80 = arith.constant 80 : index
    %c0_12 = arith.constant 0 : index
    %28 = vector.load %arg3[%c80, %c0_12] : memref<176x192xf32, #tpu.memory_space<vmem>>, vector<16x192xf32>
    %29 = arith.addf %27, %28 : vector<16x192xf32>
    %30 = vector.extract_strided_slice %29 {offsets = [0, 0], sizes = [16, 32], strides = [1, 1]} : vector<16x192xf32> to vector<16x32xf32>
    %31 = vector.extract_strided_slice %29 {offsets = [0, 32], sizes = [16, 32], strides = [1, 1]} : vector<16x192xf32> to vector<16x32xf32>
    %32 = vector.extract_strided_slice %29 {offsets = [0, 64], sizes = [16, 32], strides = [1, 1]} : vector<16x192xf32> to vector<16x32xf32>
    %33 = vector.extract_strided_slice %29 {offsets = [0, 96], sizes = [16, 32], strides = [1, 1]} : vector<16x192xf32> to vector<16x32xf32>
    %34 = vector.extract_strided_slice %29 {offsets = [0, 128], sizes = [16, 32], strides = [1, 1]} : vector<16x192xf32> to vector<16x32xf32>
    %35 = vector.extract_strided_slice %29 {offsets = [0, 160], sizes = [16, 32], strides = [1, 1]} : vector<16x192xf32> to vector<16x32xf32>
    %c0_13 = arith.constant 0 : index
    %c0_14 = arith.constant 0 : index
    %36 = vector.load %arg3[%c0_13, %c0_14] : memref<176x192xf32, #tpu.memory_space<vmem>>, vector<16x32xf32>
    %c16 = arith.constant 16 : index
    %c0_15 = arith.constant 0 : index
    %37 = vector.load %arg3[%c16, %c0_15] : memref<176x192xf32, #tpu.memory_space<vmem>>, vector<16x32xf32>
    %38 = arith.mulf %31, %36 : vector<16x32xf32>
    %39 = arith.mulf %34, %37 : vector<16x32xf32>
    %40 = arith.addf %38, %39 : vector<16x32xf32>
    %41 = arith.mulf %32, %36 : vector<16x32xf32>
    %42 = arith.mulf %35, %37 : vector<16x32xf32>
    %43 = arith.addf %41, %42 : vector<16x32xf32>
    %c240 = arith.constant 240 : index
    %c0_16 = arith.constant 0 : index
    %44 = vector.load %arg2[%c240, %c0_16] : memref<304x192xbf16, #tpu.memory_space<vmem>>, vector<64x32xbf16>
    %45 = arith.truncf %43 : vector<16x32xf32> to vector<16x32xbf16>
    %46 = tpu.concatenate %45, %45, %45, %45 in 0 : vector<16x32xbf16>, vector<16x32xbf16>, vector<16x32xbf16>, vector<16x32xbf16> -> vector<64x32xbf16>
    %47 = arith.mulf %46, %44 : vector<64x32xbf16>
    %48 = arith.truncf %33 : vector<16x32xf32> to vector<16x32xbf16>
    %49 = tpu.concatenate %48, %48, %48, %48 in 0 : vector<16x32xbf16>, vector<16x32xbf16>, vector<16x32xbf16>, vector<16x32xbf16> -> vector<64x32xbf16>
    %50 = arith.mulf %49, %44 : vector<64x32xbf16>
    %51 = arith.truncf %40 : vector<16x32xf32> to vector<16x32xbf16>
    %cst_17 = arith.constant dense<0.000000e+00> : vector<16x64xf32>
    %52 = tpu.matmul %51, %47, %cst_17 {dimension_numbers = #tpu.dot_dimension_numbers<[1], [1], [0], [0], [0, 0, 1, 0], [], []>} : vector<16x32xbf16>, vector<64x32xbf16>, vector<16x64xf32> -> vector<16x64xf32>
    %c32 = arith.constant 32 : index
    %c0_18 = arith.constant 0 : index
    %53 = vector.load %arg3[%c32, %c0_18] : memref<176x192xf32, #tpu.memory_space<vmem>>, vector<16x64xf32>
    %54 = arith.addf %52, %53 : vector<16x64xf32>
    %cst_19 = arith.constant dense<0xFF800000> : vector<16xf32>
    %55 = vector.multi_reduction <maximumf>, %54, %cst_19 [1] : vector<16x64xf32> to vector<16xf32>
    %56 = vector.shape_cast %55 : vector<16xf32> to vector<16x1xf32>
    %57 = vector.broadcast %56 : vector<16x1xf32> to vector<16x64xf32>
    %58 = arith.subf %54, %57 : vector<16x64xf32>
    %59 = math.exp %58 : vector<16x64xf32>
    %60 = arith.truncf %59 : vector<16x64xf32> to vector<16x64xbf16>
    %cst_20 = arith.constant dense<0.000000e+00> : vector<16x32xf32>
    %61 = tpu.matmul %60, %50, %cst_20 {dimension_numbers = #tpu.dot_dimension_numbers<[1], [0], [0], [1], [0, 0, 1, 1], [], []>} : vector<16x64xbf16>, vector<64x32xbf16>, vector<16x32xf32> -> vector<16x32xf32>
    %cst_21 = arith.constant dense<0.000000e+00> : vector<16x32xf32>
    %62 = tpu.matmul %60, %44, %cst_21 {dimension_numbers = #tpu.dot_dimension_numbers<[1], [0], [0], [1], [0, 0, 1, 1], [], []>} : vector<16x64xbf16>, vector<64x32xbf16>, vector<16x32xf32> -> vector<16x32xf32>
    %63 = tpu.reciprocal %62 : vector<16x32xf32> -> vector<16x32xf32>
    %64 = arith.mulf %61, %63 : vector<16x32xf32>
    %65 = arith.truncf %64 : vector<16x32xf32> to vector<16x32xbf16>
    %c48_22 = arith.constant 48 : index
    %c0_23 = arith.constant 0 : index
    %66 = vector.load %arg2[%c48_22, %c0_23] : memref<304x192xbf16, #tpu.memory_space<vmem>>, vector<32x32xbf16>
    %cst_24 = arith.constant dense<0.000000e+00> : vector<16x32xf32>
    %67 = tpu.matmul %65, %66, %cst_24 {dimension_numbers = #tpu.dot_dimension_numbers<[1], [0], [0], [1], [0, 0, 1, 1], [], []>} : vector<16x32xbf16>, vector<32x32xbf16>, vector<16x32xf32> -> vector<16x32xf32>
    %c96 = arith.constant 96 : index
    %c0_25 = arith.constant 0 : index
    %68 = vector.load %arg3[%c96, %c0_25] : memref<176x192xf32, #tpu.memory_space<vmem>>, vector<16x32xf32>
    %69 = arith.addf %67, %68 : vector<16x32xf32>
    %70 = arith.addf %69, %30 : vector<16x32xf32>
    %c112 = arith.constant 112 : index
    %c0_26 = arith.constant 0 : index
    %71 = vector.load %arg3[%c112, %c0_26] : memref<176x192xf32, #tpu.memory_space<vmem>>, vector<16x32xf32>
    %c128 = arith.constant 128 : index
    %c0_27 = arith.constant 0 : index
    %72 = vector.load %arg3[%c128, %c0_27] : memref<176x192xf32, #tpu.memory_space<vmem>>, vector<16x32xf32>
    %cst_28 = arith.constant dense<0.000000e+00> : vector<16xf32>
    %73 = vector.multi_reduction <add>, %70, %cst_28 [1] : vector<16x32xf32> to vector<16xf32>
    %74 = vector.shape_cast %73 : vector<16xf32> to vector<16x1xf32>
    %cst_29 = arith.constant 3.200000e+01 : f32
    %75 = vector.broadcast %cst_29 : f32 to vector<16x1xf32>
    %76 = arith.divf %74, %75 : vector<16x1xf32>
    %77 = vector.broadcast %76 : vector<16x1xf32> to vector<16x32xf32>
    %78 = arith.subf %70, %77 : vector<16x32xf32>
    %79 = arith.mulf %78, %78 : vector<16x32xf32>
    %cst_30 = arith.constant dense<0.000000e+00> : vector<16xf32>
    %80 = vector.multi_reduction <add>, %79, %cst_30 [1] : vector<16x32xf32> to vector<16xf32>
    %81 = vector.shape_cast %80 : vector<16xf32> to vector<16x1xf32>
    %cst_31 = arith.constant 3.200000e+01 : f32
    %82 = vector.broadcast %cst_31 : f32 to vector<16x1xf32>
    %83 = arith.divf %81, %82 : vector<16x1xf32>
    %84 = vector.broadcast %76 : vector<16x1xf32> to vector<16x32xf32>
    %85 = arith.subf %70, %84 : vector<16x32xf32>
    %cst_32 = arith.constant 9.99999974E-6 : f32
    %86 = vector.broadcast %cst_32 : f32 to vector<16x1xf32>
    %87 = arith.addf %83, %86 : vector<16x1xf32>
    %88 = math.rsqrt %87 : vector<16x1xf32>
    %89 = vector.broadcast %88 : vector<16x1xf32> to vector<16x32xf32>
    %90 = arith.mulf %85, %89 : vector<16x32xf32>
    %91 = arith.mulf %90, %71 : vector<16x32xf32>
    %92 = arith.addf %91, %72 : vector<16x32xf32>
    %93 = arith.truncf %92 : vector<16x32xf32> to vector<16x32xbf16>
    %c80_33 = arith.constant 80 : index
    %c0_34 = arith.constant 0 : index
    %94 = vector.load %arg2[%c80_33, %c0_34] : memref<304x192xbf16, #tpu.memory_space<vmem>>, vector<32x128xbf16>
    %cst_35 = arith.constant dense<0.000000e+00> : vector<16x128xf32>
    %95 = tpu.matmul %93, %94, %cst_35 {dimension_numbers = #tpu.dot_dimension_numbers<[1], [0], [0], [1], [0, 0, 1, 1], [], []>} : vector<16x32xbf16>, vector<32x128xbf16>, vector<16x128xf32> -> vector<16x128xf32>
    %c144 = arith.constant 144 : index
    %c0_36 = arith.constant 0 : index
    %96 = vector.load %arg3[%c144, %c0_36] : memref<176x192xf32, #tpu.memory_space<vmem>>, vector<16x128xf32>
    %97 = arith.addf %95, %96 : vector<16x128xf32>
    %cst_37 = arith.constant 0.000000e+00 : f32
    %98 = vector.broadcast %cst_37 : f32 to vector<16x128xf32>
    %99 = arith.maximumf %97, %98 : vector<16x128xf32>
    %100 = arith.truncf %99 : vector<16x128xf32> to vector<16x128xbf16>
    %c112_38 = arith.constant 112 : index
    %c0_39 = arith.constant 0 : index
    %101 = vector.load %arg2[%c112_38, %c0_39] : memref<304x192xbf16, #tpu.memory_space<vmem>>, vector<128x32xbf16>
    %cst_40 = arith.constant dense<0.000000e+00> : vector<16x32xf32>
    %102 = tpu.matmul %100, %101, %cst_40 {dimension_numbers = #tpu.dot_dimension_numbers<[1], [0], [0], [1], [0, 0, 1, 1], [], []>} : vector<16x128xbf16>, vector<128x32xbf16>, vector<16x32xf32> -> vector<16x32xf32>
    %c160 = arith.constant 160 : index
    %c0_41 = arith.constant 0 : index
    %103 = vector.load %arg3[%c160, %c0_41] : memref<176x192xf32, #tpu.memory_space<vmem>>, vector<16x32xf32>
    %104 = arith.addf %102, %103 : vector<16x32xf32>
    %105 = arith.addf %104, %70 : vector<16x32xf32>
    %c0_42 = arith.constant 0 : index
    %c0_43 = arith.constant 0 : index
    %106 = vector.load %arg4[%c0_42, %c0_43] : memref<16x32xf32, #tpu.memory_space<vmem>>, vector<16x32xf32>
    tpu.vector_store %arg4[%c0_42, %c0_43], %105 {strides = array<i32>} : memref<16x32xf32, #tpu.memory_space<vmem>>, vector<16x32xf32>,
    return
  }
}

</mosaic_0001>

<bundles_post_ra>
// kernel: forward.1
= control target key start
LH: loop header
LB: loop body
LE: loop exit
PB: predicated region body
PF: predicated region fallthrough
CT: control target
= control target key end

     0   :  { %vm27_vm0 = vcmask 261120   ;;  %s1291_s0 = inlined_call_operand.vmem [shape: f32[16,32], index: 0, kind: input, shape index: {}]   ;;  %s1292_s1 = inlined_call_operand.vmem [shape: f32[16,16], index: 1, kind: input, shape index: {}]   ;;  %s1293_s2 = inlined_call_operand.vmem [shape: bf16[304,192], index: 2, kind: input, shape index: {}]   ;;  %s1294_s3 = inlined_call_operand.vmem [shape: f32[176,192], index: 3, kind: input, shape index: {}]   ;;  %s1295_s4 = inlined_call_operand.hbm [shape: f32[16,32], index: 4, kind: output, shape index: {}]  }
   0x1   :  { %v19_v0 = vld [vmem:[%s1291_s0] sm:$0xff]  ;;  %v20_v1 = vld [vmem:[%s1291_s0 + $0x8] sm:$0xff] }
   0x2   :  { %v28_v2 = vsel %vm27_vm0, %v19_v0, 0.0  ;;  %v31_v3 = vsel %vm27_vm0, %v20_v1, 0.0 }
   0x3   :  { %29 = vadd.xlane.f32.xlu0 %v28_v2 }
   0x7   :  { %32 = vadd.xlane.f32.xlu0 %v31_v3 }
   0x8   :  { %9 = vsyncpa [#allocation3], 0  ;;  %v21_v4 = vld [vmem:[%s1292_s1] sm:$0xff]  ;;  %v22_v5 = vld [vmem:[%s1292_s1 + $0x8] sm:$0xff]  ;;  %s971_s23 = smov 32   ;;  %v972_v23 = vmov 0  }
   0x9   :  { %v901_v6 = vpack.i.bf16 %v22_v5, %v21_v4  ;;  %v906_v17 = vld [vmem:[%s1293_s2 + $0x4] ss:$8 sps:$4 sm:$0xff]   ;;  %v908_v18 = vld [vmem:[%s1293_s2] ss:$8 sps:$4 sm:$0xff]   ;;  %v909_v19 = vld [vmem:[%s1293_s2 + $0x14] ss:$8 sps:$4 sm:$0xff]   ;;  %146 = vmatprep.mubr.bf16.mxu1 %v972_v23 }
   0xa   :  { %114 = vmatprep.subr.bf16.mxu1 %v906_v17  ;;  %v911_v20 = vld [vmem:[%s1293_s2 + $0x10] ss:$8 sps:$4 sm:$0xff]   ;;  %v912_v21 = vld [vmem:[%s1293_s2 + $0x24] ss:$8 sps:$4 sm:$0xff]   ;;  %v914_v22 = vld [vmem:[%s1293_s2 + $0x20] ss:$8 sps:$4 sm:$0xff]  }
   0xb   :  { %115 = vmatpush1.bf16.msra.mxu1 %v908_v18  ;;  %v159_v24 = vld [vmem:[%s1294_s3 + $0x20] sm:$0xff]  ;;  %v158_v25 = vld [vmem:[%s1294_s3 + $0x10] sm:$0xff]  ;;  %s973_s14 = smov 64   ;;  %vm110_vm1 = vcmask 392192   ;;  %v77_v53 = vld [vmem:[%s1294_s3 + $0xa8] sm:$0xff]  ;;  %s975_s15 = smov 96  }
   0xc   :  { %116 = vmatprep.subr.bf16.mxu1 %v909_v19  ;;  %v160_v26 = vld [vmem:[%s1294_s3 + $0x30] sm:$0xff]  ;;  %v157_v27 = vld [vmem:[%s1294_s3] sm:$0xff]  ;;  %v79_v56 = vld [vmem:[%s1294_s3 + $0xb8] sm:$0xff]  ;;  %vm976_vm2 = vmmov 0   ;;  %vm347_vm3 = vcmask 523264   ;;  %s977_s6 = smov [#allocation2]  }
   0xd   :  { %v23_v35 = vld [vmem:[%s1294_s3 + $0x60] sm:$0xff]  ;;  %v24_v39 = vld [vmem:[%s1294_s3 + $0x70] sm:$0xff]  ;;  %s751_s7 = sshll.u32 %s977_s6, 4  ;;  %s752_s7 = int_to_ptr.vmem [resolvable:$true] %s751_s7 }
   0xe   :  { %v25_v40 = vld [vmem:[%s1294_s3 + $0x80] sm:$0xff]  ;;  %v26_v43 = vld [vmem:[%s1294_s3 + $0x90] sm:$0xff]  ;;  %s947_s8 = scalar_lea.vmem %s752_s7, 256  ;;  %p952_p1 = scmp.lt.s32.totalorder %s752_s7, %s752_s7 }
   0xf   :  { %117 = vmatpush1.bf16.msra.mxu1 %v911_v20  ;;  %v1093_v2 = vld [vmem:[%s1293_s2 + $0x110] ss:$8 sps:$4 sm:$0xff]   ;;  %v1100_v3 = vld [vmem:[%s1293_s2 + $0x120] ss:$8 sps:$4 sm:$0xff]   ;;  %p948_p0 = scmp.ne.s32.totalorder %s752_s7, %s947_s8  ;;  %p953_p2 = scmp.lt.s32.totalorder %s947_s8, %s947_s8 }
  0x10   :  { %118 = vmatprep.subr.bf16.mxu1 %v912_v21 }
  0x11   :  { %p954_p3 = por %p953_p2, %p952_p1 }
  0x13   :  { %119 = vmatpush1.bf16.msra.mxu1 %v914_v22  ;;  %p955_p4 = pnand %p954_p3, %p948_p0 }
  0x1d   :  { %902 = vrot.lane.b32.xlu0 %v901_v6, %s971_s23  ;;  %v76_v6 = vld [vmem:[%s1294_s3 + $0xa0] sm:$0xff] }
  0x21   :  { %185 = vrot.lane.b32.xlu0 %v158_v25, %s973_s14 }
  0x90   :  { %v30_v7 = vpop.xlane.xlu0 %29 }
  0x91   :  { %v35_v8 = vmul.f32 0.03125, %v30_v7  ;;  %v78_v7 = vld [vmem:[%s1294_s3 + $0xb0] sm:$0xff] }
  0x93   :  { %v37_v9 = vsub.f32 %v19_v0, %v35_v8  ;;  %v1080_v0 = vld [vmem:[%s1293_s2 + $0xf0] ss:$8 sps:$4 sm:$0xff]  }
  0x94   :  { %v33_v10 = vpop.xlane.xlu0 %32 }
  0x95   :  { %v36_v11 = vmul.f32 0.03125, %v33_v10  ;;  %v39_v12 = vmul.f32 %v37_v9, %v37_v9 }
  0x97   :  { %v38_v13 = vsub.f32 %v20_v1, %v36_v11  ;;  %v41_v14 = vsel %vm27_vm0, %v39_v12, 0.0  ;;  %v1086_v1 = vld [vmem:[%s1293_s2 + $0x100] ss:$8 sps:$4 sm:$0xff]  }
  0x98   :  { %42 = vadd.xlane.f32.xlu1 %v41_v14  ;;  %v903_v41 = vpop.permute.xlu0 %902 }
  0x99   :  { %v40_v15 = vmul.f32 %v38_v13, %v38_v13  ;;  %v905_v46 = vunpack.i.h.bf16 %v903_v41  ;;  %v904_v47 = vunpack.i.l.bf16 %v903_v41 }
  0x9b   :  { %v44_v16 = vsel %vm27_vm0, %v40_v15, 0.0 }
  0x9c   :  { %45 = vadd.xlane.f32.xlu1 %v44_v16  ;;  %v186_v12 = vpop.permute.xlu0 %185 }
  0xad   :  { %193 = vrot.lane.b32.xlu1 %v159_v24, %s971_s23 }
  0xb1   :  { %195 = vrot.lane.b32.xlu1 %v160_v26, %s971_s23 }
  0xb5   :  { %183 = vrot.lane.b32.xlu1 %v157_v27, %s973_s14 }
 0x125   :  { %v43_v28 = vpop.xlane.xlu1 %42 }
 0x126   :  { %v47_v29 = vmul.f32 0.03125, %v43_v28 }
 0x128   :  { %v49_v30 = vadd.f32 1e-05, %v47_v29 }
 0x129   :  { %v46_v31 = vpop.xlane.xlu1 %45 }
 0x12a   :  { %931 = vrsqrt.f32 %v49_v30  ;;  %v48_v32 = vmul.f32 0.03125, %v46_v31 }
 0x12c   :  { %v50_v33 = vadd.f32 1e-05, %v48_v32 }
 0x12d   :  { %v194_v52 = vpop.permute.xlu1 %193 }
 0x12e   :  { %933 = vrsqrt.f32 %v50_v33 }
 0x131   :  { %v196_v62 = vpop.permute.xlu1 %195 }
 0x134   :  { %v932_v34 = vpop.eup %931 }
 0x135   :  { %v53_v36 = vmul.f32 %v932_v34, %v37_v9  ;;  %v184_v8 = vpop.permute.xlu1 %183  ;;  %v974_v9 = vmov 0.0  }
 0x136   :  { %820 = vmatprep.subr.bf16.mxu1 %v974_v9  ;;  %832 = vmatprep.subr.bf16.mxu0 %v974_v9 }
 0x137   :  { %v55_v37 = vmul.f32 %v53_v36, %v23_v35  ;;  %840 = vmatprep.mubr.msk.bf16.mxu0 %vm976_vm2, %v974_v9 }
 0x138   :  { %v934_v38 = vpop.eup %933 }
 0x139   :  { %v54_v42 = vmul.f32 %v934_v38, %v38_v13  ;;  %v57_v45 = vadd.f32 %v55_v37, %v25_v40 }
 0x13b   :  { %v56_v44 = vmul.f32 %v54_v42, %v24_v39  ;;  %v67_v50 = vsel %vm27_vm0, %v57_v45, %v904_v47 }
 0x13d   :  { %v58_v48 = vadd.f32 %v56_v44, %v26_v43 }
 0x13f   :  { %v68_v49 = vsel %vm27_vm0, %v58_v48, %v905_v46 }
 0x140   :  { %v69_v51 = vpack.c.bf16 %v68_v49, %v67_v50 }
 0x142   :  { %768 = vmatmul.mubr.msk.bf16.vlgmr.msra.gmra.mrb[0].mxu1 %vm110_vm1, %v69_v51 }
 0x143   :  { %828 = vmatprep.mubr.msk.bf16.mxu1 %vm976_vm2, %v974_v9 }
 0x215   :  { %v148_v54 = vpop.f32.mrb[0].mxu1 }
 0x216   :  { %v150_v55 = vpop.f32.mrb[1].mxu1  ;;  %v1118_v10 = vadd.f32 %v148_v54, %v76_v6 }
 0x217   :  { %v151_v57 = vadd.f32 %v150_v55, %v77_v53  ;;  %v152_v58 = vpop.f32.mrb[2].mxu1  ;;  %v274_v55 = vld [vmem:[%s1294_s3 + $0x40] sm:$0xff] }
 0x218   :  { %v154_v59 = vpop.f32.mrb[3].mxu1  ;;  %v1120_v11 = vadd.f32 %v152_v58, %v78_v7  ;;  %v189_v14 = vmul.f32 %v184_v8, %v1118_v10 }
 0x219   :  { %v199_v60 = vmul.f32 %v194_v52, %v151_v57  ;;  %v155_v61 = vadd.f32 %v154_v59, %v79_v56  ;;  %v171_v4 = vmul.f32 %v159_v24, %v151_v57  ;;  %v275_v57 = vld [vmem:[%s1294_s3 + $0x50] sm:$0xff] }
 0x21a   :  { %v190_v15 = vmul.f32 %v186_v12, %v1120_v11  ;;  %v256_v41 = vpack.c.bf16 %v1120_v11, %v1118_v10 }
 0x21b   :  { %v200_v63 = vmul.f32 %v196_v62, %v155_v61  ;;  %203 = vrot.lane.b32.xlu1 %v199_v60, %s971_s23  ;;  %v172_v5 = vmul.f32 %v160_v26, %v155_v61 }
 0x21d   :  { %205 = vrot.lane.b32.xlu0 %v200_v63, %s971_s23 }
 0x21f   :  { %240 = vrot.lane.b32.xlu1 %v1080_v0, %s973_s14 }
 0x221   :  { %242 = vrot.lane.b32.xlu0 %v1086_v1, %s973_s14 }
 0x223   :  { %244 = vrot.lane.b32.xlu1 %v1093_v2, %s973_s14 }
 0x225   :  { %246 = vrot.lane.b32.xlu0 %v1100_v3, %s973_s14 }
 0x227   :  { %163 = vrot.lane.b32.xlu1 %v157_v27, %s971_s23 }
 0x229   :  { %165 = vrot.lane.b32.xlu0 %v158_v25, %s971_s23 }
 0x22b   :  { %175 = vrot.lane.b32.xlu1 %v171_v4, %s971_s23 }
 0x22d   :  { %177 = vrot.lane.b32.xlu0 %v172_v5, %s971_s23 }
 0x28d   :  { %v204_v13 = vpop.permute.xlu1 %203 }
 0x28e   :  { %v209_v17 = vadd.f32 %v204_v13, %v189_v14 }
 0x28f   :  { %v206_v16 = vpop.permute.xlu0 %205 }
 0x290   :  { %v210_v18 = vadd.f32 %v206_v16, %v190_v15 }
 0x291   :  { %v241_v19 = vpop.permute.xlu1 %240 }
 0x292   :  { %v219_v20 = vpack.c.bf16 %v210_v18, %v209_v17 }
 0x293   :  { %v243_v21 = vpop.permute.xlu0 %242 }
 0x294   :  { %v252_v22 = vmul.bf16 %v241_v19, %v219_v20  ;;  %v253_v23 = vmul.bf16 %v243_v21, %v219_v20 }
 0x295   :  { %v245_v24 = vpop.permute.xlu1 %244 }
 0x296   :  { %285 = vrot.lane.b32.xlu0 %v253_v23, %s973_s14  ;;  %283 = vrot.lane.b32.xlu1 %v252_v22, %s973_s14  ;;  %v254_v26 = vmul.bf16 %v245_v24, %v219_v20 }
 0x297   :  { %v247_v25 = vpop.permute.xlu0 %246 }
 0x298   :  { %v255_v27 = vmul.bf16 %v247_v25, %v219_v20 }
 0x299   :  { %v164_v28 = vpop.permute.xlu1 %163 }
 0x29a   :  { %289 = vrot.lane.b32.xlu0 %v255_v27, %s973_s14  ;;  %287 = vrot.lane.b32.xlu1 %v254_v26, %s973_s14  ;;  %v169_v31 = vmul.f32 %v164_v28, %v1118_v10 }
 0x29b   :  { %v166_v29 = vpop.permute.xlu0 %165 }
 0x29c   :  { %v170_v32 = vmul.f32 %v166_v29, %v1120_v11 }
 0x29d   :  { %v176_v30 = vpop.permute.xlu1 %175 }
 0x29e   :  { %257 = vrot.lane.b32.xlu0 %v1080_v0, %s975_s15  ;;  %v181_v34 = vadd.f32 %v176_v30, %v169_v31 }
 0x29f   :  { %v178_v33 = vpop.permute.xlu0 %177 }
 0x2a0   :  { %v182_v35 = vadd.f32 %v178_v33, %v170_v32  ;;  %v475_v32 = vld [vmem:[%s1294_s3 + $0xc0] sm:$0xff] }
 0x2a2   :  { %v273_v36 = vpack.c.bf16 %v182_v35, %v181_v34  ;;  %261 = vrot.lane.b32.xlu0 %v1093_v2, %s975_s15  ;;  %v476_v34 = vld [vmem:[%s1294_s3 + $0xd0] sm:$0xff] }
 0x2a4   :  { %277 = vrot.lane.b32.xlu1 %v273_v36, %s975_s15 }
 0x2a8   :  { %259 = vrot.lane.b32.xlu1 %v1086_v1, %s975_s15 }
 0x2ac   :  { %263 = vrot.lane.b32.xlu1 %v1100_v3, %s975_s15 }
 0x308   :  { %v286_v37 = vpop.permute.xlu0 %285  ;;  %v284_v38 = vpop.permute.xlu1 %283 }
 0x309   :  { %v295_v39 = vsel %vm27_vm0, %v284_v38, 0  ;;  %v298_v43 = vsel %vm27_vm0, %v286_v37, 0 }
 0x30a   :  { %821 = vmatpush3.bf16.xpose.msra.mxu1 %v295_v39 }
 0x30b   :  { %822 = vmatprep.subr.bf16.mxu1 %v974_v9 }
 0x30c   :  { %v290_v40 = vpop.permute.xlu0 %289  ;;  %v288_v45 = vpop.permute.xlu1 %287 }
 0x30d   :  { %v301_v47 = vsel %vm27_vm0, %v288_v45, 0  ;;  %v304_v50 = vsel %vm27_vm0, %v290_v40, 0 }
 0x310   :  { %v258_v42 = vpop.permute.xlu0 %257 }
 0x311   :  { %v269_v44 = vmul.bf16 %v258_v42, %v256_v41 }
 0x312   :  { %823 = vmatpush3.bf16.xpose.msra.mxu1 %v298_v43 }
 0x313   :  { %365 = vrot.lane.b32.xlu0 %v269_v44, %s971_s23  ;;  %824 = vmatprep.subr.bf16.mxu1 %v974_v9 }
 0x314   :  { %v262_v51 = vpop.permute.xlu0 %261 }
 0x315   :  { %v271_v6 = vmul.bf16 %v262_v51, %v256_v41 }
 0x316   :  { %v278_v46 = vpop.permute.xlu1 %277 }
 0x31a   :  { %825 = vmatpush3.bf16.xpose.msra.mxu1 %v301_v47  ;;  %v260_v48 = vpop.permute.xlu1 %259 }
 0x31b   :  { %v270_v49 = vmul.bf16 %v260_v48, %v256_v41  ;;  %826 = vmatprep.subr.bf16.mxu1 %v974_v9 }
 0x31d   :  { %367 = vrot.lane.b32.xlu1 %v270_v49, %s971_s23 }
 0x31e   :  { %v264_v53 = vpop.permute.xlu1 %263 }
 0x31f   :  { %v272_v5 = vmul.bf16 %v264_v53, %v256_v41  ;;  %v922_v53 = vld [vmem:[%s1293_s2 + $0x60] ss:$8 sps:$4 sm:$0xff]  }
 0x322   :  { %827 = vmatpush3.bf16.xpose.msra.mxu1 %v304_v50 }
 0x323   :  { %856 = vmatprep.subr.bf16.mxu1 %v974_v9 }
 0x329   :  { %829 = vmatmul.mubr.msk.bf16.vlgmr.msra.gmra.mrb[4].mxu1 %vm27_vm0, %v278_v46 }
 0x32a   :  { %860 = vmatprep.mubr.msk.bf16.mxu1 %vm976_vm2, %v974_v9 }
 0x385   :  { %v366_v52 = vpop.permute.xlu0 %365 }
 0x386   :  { %833 = vmatpush3.bf16.msra.mxu0 %v366_v52  ;;  %v921_v52 = vld [vmem:[%s1293_s2 + $0x50] ss:$8 sps:$4 sm:$0xff]  }
 0x387   :  { %834 = vmatprep.subr.bf16.mxu0 %v974_v9 }
 0x38f   :  { %v368_v54 = vpop.permute.xlu1 %367 }
 0x390   :  { %835 = vmatpush3.bf16.msra.mxu0 %v368_v54  ;;  %v923_v54 = vld [vmem:[%s1293_s2 + $0x70] ss:$8 sps:$4 sm:$0xff]  }
 0x391   :  { %836 = vmatprep.subr.bf16.mxu0 %v974_v9 }
 0x3fc   :  { %v340_v56 = vpop.f32.mrb[4].mxu1 }
 0x3fd   :  { %v341_v58 = vadd.f32 %v340_v56, %v274_v55  ;;  %v830_v59 = vpop.f32.mrb[5].mxu1  ;;  %v924_v55 = vld [vmem:[%s1293_s2 + $0x80] ss:$8 sps:$4 sm:$0xff]   ;;  %v925_v56 = vld [vmem:[%s1293_s2 + $0x90] ss:$8 sps:$4 sm:$0xff]  }
 0x3fe   :  { %v343_v60 = vpop.f32.mrb[6].mxu1  ;;  %v928_v59 = vld [vmem:[%s1293_s2 + $0xc0] ss:$8 sps:$4 sm:$0xff]  }
 0x3ff   :  { %v344_v61 = vadd.f32 %v343_v60, %v275_v57  ;;  %v831_v62 = vpop.f32.mrb[7].mxu1  ;;  %v348_v63 = vsel %vm347_vm3, %v341_v58, -inf  ;;  %v926_v57 = vld [vmem:[%s1293_s2 + $0xa0] ss:$8 sps:$4 sm:$0xff]  }
 0x400   :  { %349 = vmax.xlane.f32.xlu0 %v348_v63 }
 0x401   :  { %v351_v4 = vsel %vm347_vm3, %v344_v61, -inf }
 0x402   :  { %352 = vmax.xlane.f32.xlu1 %v351_v4 }
 0x413   :  { %371 = vrot.lane.b32.xlu1 %v272_v5, %s971_s23 }
 0x416   :  { %369 = vrot.lane.b32.xlu0 %v271_v6, %s971_s23 }
 0x48d   :  { %v350_v7 = vpop.xlane.xlu0 %349 }
 0x48e   :  { %v354_v8 = vsub.f32 %v341_v58, %v350_v7  ;;  %v927_v58 = vld [vmem:[%s1293_s2 + $0xb0] ss:$8 sps:$4 sm:$0xff]  }
 0x48f   :  { %v353_v12 = vpop.xlane.xlu1 %352 }
 0x490   :  { %v356_v13 = vmul.f32 1.442695, %v354_v8  ;;  %v355_v14 = vsub.f32 %v344_v61, %v353_v12  ;;  %v535_v8 = vld [vmem:[%s1294_s3 + $0xe0] sm:$0xff] }
 0x491   :  { %v370_v15 = vpop.permute.xlu0 %369 }
 0x492   :  { %v358_v16 = vmul.f32 1.442695, %v355_v14  ;;  %837 = vmatpush3.bf16.msra.mxu0 %v370_v15  ;;  %935 = vpow2.f32 %v356_v13  ;;  %v536_v13 = vld [vmem:[%s1294_s3 + $0xf0] sm:$0xff] }
 0x493   :  { %838 = vmatprep.subr.bf16.mxu0 %v974_v9  ;;  %v372_v17 = vpop.permute.xlu1 %371 }
 0x494   :  { %937 = vpow2.f32 %v358_v16  ;;  %v537_v16 = vld [vmem:[%s1294_s3 + $0x100] sm:$0xff] }
 0x496   :  { %839 = vmatpush3.bf16.msra.mxu0 %v372_v17  ;;  %v538_v17 = vld [vmem:[%s1294_s3 + $0x110] sm:$0xff] }
 0x497   :  { %844 = vmatprep.subr.bf16.mxu0 %v974_v9 }
 0x49c   :  { %v936_v18 = vpop.eup %935 }
 0x49e   :  { %v938_v19 = vpop.eup %937 }
 0x49f   :  { %v360_v20 = vpack.c.bf16 %v938_v19, %v936_v18 }
 0x4a1   :  { %841 = vmatmul.mubr.msk.bf16.vlgmr.msra.gmra.mrb[0].mxu0 %vm347_vm3, %v360_v20 }
 0x4a2   :  { %845 = vmatpush3.bf16.msra.mxu0 %v1080_v0  ;;  %852 = vmatprep.mubr.msk.bf16.mxu0 %vm976_vm2, %v974_v9  ;;  %v919_v0 = vld [vmem:[%s1293_s2 + $0x30] ss:$8 sps:$4 sm:$0xff]  }
 0x4a3   :  { %846 = vmatprep.subr.bf16.mxu0 %v974_v9  ;;  %857 = vmatpush3.bf16.msra.mxu1 %v919_v0 }
 0x4a4   :  { %858 = vmatprep.subr.bf16.mxu1 %v974_v9 }
 0x4a6   :  { %847 = vmatpush3.bf16.msra.mxu0 %v1086_v1  ;;  %v920_v1 = vld [vmem:[%s1293_s2 + $0x40] ss:$8 sps:$4 sm:$0xff]  }
 0x4a7   :  { %848 = vmatprep.subr.bf16.mxu0 %v974_v9  ;;  %859 = vmatpush3.bf16.msra.mxu1 %v920_v1  ;;  %v929_v1 = vld [vmem:[%s1293_s2 + $0xd0] ss:$8 sps:$4 sm:$0xff]  }
 0x4a8   :  { %864 = vmatprep.subr.bf16.mxu1 %v974_v9 }
 0x4aa   :  { %849 = vmatpush3.bf16.msra.mxu0 %v1093_v2 }
 0x4ab   :  { %850 = vmatprep.subr.bf16.mxu0 %v974_v9 }
 0x4ae   :  { %851 = vmatpush3.bf16.msra.mxu0 %v1100_v3 }
 0x4af   :  { %872 = vmatprep.subr.bf16.mxu0 %v974_v9 }
 0x4b1   :  { %853 = vmatmul.mubr.msk.bf16.vlgmr.msra.gmra.mrb[4].mxu0 %vm347_vm3, %v360_v20 }
 0x4b2   :  { %888 = vmatprep.mubr.msk.bf16.mxu0 %vm976_vm2, %v974_v9  ;;  %873 = vmatpush3.bf16.msra.mxu0 %v923_v54 }
 0x4b3   :  { %874 = vmatprep.subr.bf16.mxu0 %v974_v9 }
 0x4b6   :  { %875 = vmatpush3.bf16.msra.mxu0 %v924_v55 }
 0x4b7   :  { %876 = vmatprep.subr.bf16.mxu0 %v974_v9 }
 0x4ba   :  { %877 = vmatpush3.bf16.msra.mxu0 %v925_v56 }
 0x4bb   :  { %878 = vmatprep.subr.bf16.mxu0 %v974_v9 }
 0x4be   :  { %879 = vmatpush3.bf16.msra.mxu0 %v926_v57 }
 0x4bf   :  { %880 = vmatprep.subr.bf16.mxu0 %v974_v9 }
 0x4c2   :  { %881 = vmatpush3.bf16.msra.mxu0 %v927_v58 }
 0x4c3   :  { %882 = vmatprep.subr.bf16.mxu0 %v974_v9 }
 0x4c6   :  { %883 = vmatpush3.bf16.msra.mxu0 %v928_v59 }
 0x4c7   :  { %884 = vmatprep.subr.bf16.mxu0 %v974_v9 }
 0x4ca   :  { %885 = vmatpush3.bf16.msra.mxu0 %v929_v1 }
 0x4cb   :  { %886 = vmatprep.subr.bf16.mxu0 %v974_v9 }
 0x574   :  { %v414_v2 = vpop.f32.mrb[0].mxu0 }
 0x575   :  { %v842_v3 = vpop.f32.mrb[1].mxu0 }
 0x576   :  { %v417_v21 = vpop.f32.mrb[2].mxu0  ;;  %v574_v3 = vld [vmem:[%s1294_s3 + $0x120] sm:$0xff] }
 0x577   :  { %v843_v22 = vpop.f32.mrb[3].mxu0 }
 0x578   :  { %v575_v22 = vld [vmem:[%s1294_s3 + $0x130] sm:$0xff] }
 0x584   :  { %v459_v23 = vpop.f32.mrb[4].mxu0 }
 0x585   :  { %939 = vrcp.f32 %v459_v23  ;;  %v854_v24 = vpop.f32.mrb[5].mxu0 }
 0x586   :  { %v462_v25 = vpop.f32.mrb[6].mxu0 }
 0x587   :  { %941 = vrcp.f32 %v462_v25  ;;  %v855_v26 = vpop.f32.mrb[7].mxu0 }
 0x58f   :  { %v940_v27 = vpop.eup %939 }
 0x590   :  { %v468_v28 = vmul.f32 %v940_v27, %v414_v2  ;;  %v930_v2 = vld [vmem:[%s1293_s2 + $0xe0] ss:$8 sps:$4 sm:$0xff]  }
 0x591   :  { %v942_v29 = vpop.eup %941  ;;  %887 = vmatpush3.bf16.msra.mxu0 %v930_v2 }
 0x592   :  { %v469_v30 = vmul.f32 %v942_v29, %v417_v21 }
 0x594   :  { %v470_v31 = vpack.c.bf16 %v469_v30, %v468_v28  ;;  %v651_v30 = vld [vmem:[%s1294_s3 + $0x140] sm:$0xff] }
 0x596   :  { %861 = vmatmul.mubr.msk.bf16.vlgmr.msra.gmra.mrb[8].mxu1 %vm27_vm0, %v470_v31 }
 0x597   :  { %868 = vmatprep.mubr.msk.bf16.mxu1 %vm976_vm2, %v974_v9  ;;  %865 = vmatpush3.bf16.msra.mxu1 %v921_v52 }
 0x598   :  { %866 = vmatprep.subr.bf16.mxu1 %v974_v9 }
 0x59b   :  { %867 = vmatpush3.bf16.msra.mxu1 %v922_v53 }
 0x669   :  { %v526_v33 = vpop.f32.mrb[8].mxu1 }
 0x66a   :  { %v527_v35 = vadd.f32 %v526_v33, %v475_v32  ;;  %v862_v36 = vpop.f32.mrb[9].mxu1  ;;  %v652_v32 = vld [vmem:[%s1294_s3 + $0x150] sm:$0xff] }
 0x66b   :  { %v529_v37 = vpop.f32.mrb[10].mxu1 }
 0x66c   :  { %v1199_v38 = vadd.f32 %v527_v35, %v1118_v10  ;;  %v530_v39 = vadd.f32 %v529_v37, %v476_v34  ;;  %v863_v40 = vpop.f32.mrb[11].mxu1 }
 0x66e   :  { %v1202_v41 = vadd.f32 %v530_v39, %v1120_v11  ;;  %v539_v42 = vsel %vm27_vm0, %v1199_v38, 0.0 }
 0x66f   :  { %540 = vadd.xlane.f32.xlu0 %v539_v42 }
 0x670   :  { %v542_v43 = vsel %vm27_vm0, %v1202_v41, 0.0 }
 0x671   :  { %543 = vadd.xlane.f32.xlu1 %v542_v43 }
 0x6fc   :  { %v541_v44 = vpop.xlane.xlu0 %540 }
 0x6fd   :  { %v545_v45 = vmul.f32 0.03125, %v541_v44 }
 0x6fe   :  { %v544_v46 = vpop.xlane.xlu1 %543 }
 0x6ff   :  { %v547_v47 = vsub.f32 %v1199_v38, %v545_v45  ;;  %v546_v10 = vmul.f32 0.03125, %v544_v46 }
 0x701   :  { %v548_v48 = vsub.f32 %v1202_v41, %v546_v10  ;;  %v549_v49 = vmul.f32 %v547_v47, %v547_v47 }
 0x703   :  { %v551_v11 = vsel %vm27_vm0, %v549_v49, 0.0  ;;  %v550_v50 = vmul.f32 %v548_v48, %v548_v48 }
 0x704   :  { %552 = vadd.xlane.f32.xlu0 %v551_v11 }
 0x705   :  { %v554_v51 = vsel %vm27_vm0, %v550_v50, 0.0 }
 0x708   :  { %555 = vadd.xlane.f32.xlu0 %v554_v51 }
 0x791   :  { %v553_v60 = vpop.xlane.xlu0 %552 }
 0x792   :  { %v557_v61 = vmul.f32 0.03125, %v553_v60 }
 0x794   :  { %v559_v62 = vadd.f32 1e-05, %v557_v61 }
 0x795   :  { %v556_v63 = vpop.xlane.xlu0 %555 }
 0x796   :  { %943 = vrsqrt.f32 %v559_v62  ;;  %v558_v4 = vmul.f32 0.03125, %v556_v63 }
 0x798   :  { %v560_v5 = vadd.f32 1e-05, %v558_v4 }
 0x79a   :  { %945 = vrsqrt.f32 %v560_v5 }
 0x7a0   :  { %v944_v6 = vpop.eup %943 }
 0x7a1   :  { %v563_v7 = vmul.f32 %v944_v6, %v547_v47 }
 0x7a3   :  { %v565_v14 = vmul.f32 %v563_v7, %v535_v8 }
 0x7a4   :  { %v946_v12 = vpop.eup %945 }
 0x7a5   :  { %v564_v15 = vmul.f32 %v946_v12, %v548_v48  ;;  %v567_v19 = vadd.f32 %v565_v14, %v537_v16 }
 0x7a7   :  { %v566_v18 = vmul.f32 %v564_v15, %v536_v13 }
 0x7a9   :  { %v568_v20 = vadd.f32 %v566_v18, %v538_v17 }
 0x7ab   :  { %v569_v0 = vpack.c.bf16 %v568_v20, %v567_v19 }
 0x7ad   :  { %869 = vmatmul.mubr.msk.bf16.vlgmr.msra.gmra.mrb[12].mxu1 %vm27_vm0, %v569_v0 }
 0x880   :  { %v625_v21 = vpop.f32.mrb[12].mxu1 }
 0x881   :  { %v626_v23 = vadd.f32 %v625_v21, %v574_v3  ;;  %v870_v24 = vpop.f32.mrb[13].mxu1 }
 0x882   :  { %v628_v25 = vpop.f32.mrb[14].mxu1 }
 0x883   :  { %v629_v26 = vadd.f32 %v628_v25, %v575_v22  ;;  %v871_v27 = vpop.f32.mrb[15].mxu1  ;;  %v632_v9 = vmax.f32 %v626_v23, 0.0 }
 0x885   :  { %v633_v28 = vmax.f32 %v629_v26, 0.0 }
 0x887   :  { %v634_v29 = vpack.c.bf16 %v633_v28, %v632_v9 }
 0x889   :  { %889 = vmatmul.mubr.bf16.vlgmr.msra.gmra.mrb[8].mxu0 %v634_v29 }
 0x95c   :  { %v735_v31 = vpop.f32.mrb[8].mxu0 }
 0x95d   :  { %v736_v33 = vadd.f32 %v735_v31, %v651_v30  ;;  %v890_v34 = vpop.f32.mrb[9].mxu0 }
 0x95e   :  { %v738_v35 = vpop.f32.mrb[10].mxu0 }
 0x95f   :  { %v742_v36 = vadd.f32 %v736_v33, %v1199_v38  ;;  %v739_v37 = vadd.f32 %v738_v35, %v652_v32  ;;  %v891_v39 = vpop.f32.mrb[11].mxu0 }
 0x961   :  { %744 = vst.msk [vmem:[#allocation2] sm:$0xff] %vm27_vm0, %v742_v36  ;;  %v743_v40 = vadd.f32 %v739_v37, %v1202_v41 }
 0x963   :  { %745 = vst.msk [vmem:[#allocation2 + $0x8] sm:$0xff] %vm27_vm0, %v743_v40 }
 0x964   :  { %958 = shalt.err (!%p955_p4)
}
 0x965   :  { %s959_s10 = scalar_lea.hbm %s1295_s4, 256 }
 0x966   :  { %p960_p5 = scmp.ne.s32.totalorder %s1295_s4, %s959_s10  ;;  %p963_p6 = scmp.lt.u32.totalorder %s959_s10, %s1295_s4 }
 0x968   :  { %p965_p7 = pnand %p963_p6, %p960_p5 }
 0x96a   :  { %968 = shalt.err (!%p965_p7)
}
 0x96b   :  { %s978_s14 = smov 128   ;;  %s979_s16 = smov 8  }
 0x96c   :  { %757 = dma.vmem_to_hbm [thread:$0]  %s752_s7, 256, %s1295_s4, [#allocation3], %s978_s14, %s978_s14, %s979_s16  }
 0x96d   :  { %969 = dma.done.wait [#allocation3], 256  }
 0x96e   :  { %970 = vsyncadd [#allocation3], 4294967040 }
 0x96f   :  { %761 = vsyncpa [#allocation3], 1 }

</bundles_post_ra>
